<compile_context>
chip_gen: v5e
topology: v5e:2x2
jax: 0.10.0
libtpu: 0.0.40
codegen_flags: <defaults>
</compile_context>

<pallas_src>
import functools

import jax
import jax.numpy as jnp
from jax.experimental import pallas as pl
from jax.experimental.pallas import tpu as pltpu


def _round_up(x, m):
    return (x + m - 1) // m * m


def _pick_tile(total, cap):
    """Largest multiple of 128 that divides `total` (itself a multiple of 128) and is <= cap."""
    best = 128
    for t in range(256, min(cap, total) + 1, 128):
        if total % t == 0:
            best = t
    return best


# ----------------------------------------------------------------- kernel A
def _proj_kernel(feat_ref, wt_ref, proj_ref, *, ones_col):
    # proj = feature @ W^T   (bf16 operands on the MXU, f32 accumulate, stored bf16)
    p = jnp.dot(feat_ref[...], wt_ref[...], preferred_element_type=jnp.float32)
    if ones_col is not None:
        # Write 1.0 into a spare padded column so kernel B's matmul also produces the
        # (unmasked) in-degree for free in that accumulator column.
        col = jax.lax.broadcasted_iota(jnp.int32, p.shape, 1)
        p = jnp.where(col == ones_col, 1.0, p)
    proj_ref[...] = p.astype(proj_ref.dtype)


# ----------------------------------------------------------------- kernel B
def _agg_kernel(*refs, has_mask, deg_col, proj_resident, tk, tm, n_valid):
    idx = 0
    adj_ref = refs[idx]; idx += 1
    mask_ref = None
    if has_mask:
        mask_ref = refs[idx]; idx += 1
    proj_ref = refs[idx]; idx += 1
    bias_ref = refs[idx]; idx += 1
    deg_inv_ref = None
    if deg_col is None:
        deg_inv_ref = refs[idx]; idx += 1
    out_ref = refs[idx]; idx += 1
    stats_ref = refs[idx]; idx += 1
    acc_ref = refs[idx]; idx += 1

    i = pl.program_id(0)
    k = pl.program_id(1)

    @pl.when(k == 0)
    def _():
        acc_ref[...] = jnp.zeros_like(acc_ref)

    a = adj_ref[...]                                             # (tm, tk) bf16, exact 0/1
    if has_mask:
        a = a * mask_ref[...]                                    # fn.src_mul_edge fused on VPU
    if proj_resident:
        start = pl.multiple_of(k * tk, 128)
        p = proj_ref[pl.ds(start, tk), :]                        # VMEM-resident proj, sliced
    else:
        p = proj_ref[...]                                        # streamed (tk, dout_p) block
    acc_ref[...] += jnp.dot(a, p, preferred_element_type=jnp.float32)   # MXU, f32 accumulate

    @pl.when(k == pl.num_programs(1) - 1)
    def _():
        acc = acc_ref[...]
        if deg_col is not None:
            # unmasked in-degree was accumulated in the spare proj column (MXU-free degree)
            col = jax.lax.broadcasted_iota(jnp.int32, acc.shape, 1)
            deg = jnp.sum(jnp.where(col == deg_col, acc, 0.0), axis=1, keepdims=True)
            deg_inv = jnp.where(deg > 0.0, 1.0 / jnp.maximum(deg, 1.0), 0.0)
        else:
            deg_inv = deg_inv_ref[...]                           # (tm, 1) precomputed 1/deg
        h = acc * deg_inv + bias_ref[...]
        out_ref[...] = h.astype(out_ref.dtype)

        # fused BatchNorm partial statistics over valid rows of this tile
        rows = i * tm + jax.lax.broadcasted_iota(jnp.int32, (tm, 1), 0)
        hm = jnp.where(rows < n_valid, h, 0.0)
        s = jnp.sum(hm, axis=0, keepdims=True)
        ss = jnp.sum(hm * hm, axis=0, keepdims=True)
        pad = jnp.zeros((6, h.shape[1]), jnp.float32)
        stats_ref[0] = jnp.concatenate([s, ss, pad], axis=0)


# ----------------------------------------------------------------- kernel C
def _bn_act_res_kernel(*refs, activation, residual):
    if residual:
        h_ref, scale_ref, shift_ref, hin_ref, out_ref = refs
    else:
        h_ref, scale_ref, shift_ref, out_ref = refs
        hin_ref = None
    h = h_ref[...] * scale_ref[...] + shift_ref[...]              # BatchNorm as affine
    if activation:
        h = jnp.maximum(h, 0.0)
    if residual:
        h = h + hin_ref[...]
    # dropout: identity in eval mode.
    out_ref[...] = h.astype(out_ref.dtype)


# ----------------------------------------------------------------- wrapper
def gcn_layer_forward(adj, feature, weight, bias, gamma, beta, *,
                      data_mask=None, data_mask_node=None,
                      batch_norm=True, activation=True, residual=True,
                      adj_dtype=jnp.bfloat16):
    """adj: [N, N] with adj[dst, src] = 1 per edge, feature: [N, in_dim],
    weight: [out_dim, in_dim] (nn.Linear layout), bias/gamma/beta: [out_dim]."""
    f32 = jnp.float32
    bf16 = jnp.bfloat16
    n, din = feature.shape
    dout = weight.shape[0]
    has_mask = data_mask is not None

    h_in = feature                                  # residual uses the pre-mask feature
    if data_mask_node is not None:
        feature = feature * data_mask_node

    # ---- asymmetric, 128-aligned padding (rows by tm, columns by tk) -------
    n128 = _round_up(max(n, 1), 128)
    din_p = _round_up(din, 128)
    dout_p = _round_up(dout, 128)

    tk = _pick_tile(n128, 1024)                     # reduction (neighbor) tile; divides n128
    n_cols_p = n128
    tm = _pick_tile(n128, 512)                      # output-row tile
    if tm == 128 and n128 >= 4096:
        tm = 512                                    # big graphs: step overhead > small row padding
    n_rows_p = _round_up(n, tm)
    nrt = n_rows_p // tm
    nkt = n_cols_p // tk

    # degree via spare MXU column only valid when the matmul LHS is the UNMASKED adjacency
    deg_col = (not has_mask) and (dout < dout_p)
    ones_col = dout if deg_col else None

    adj_p = jnp.zeros((n_rows_p, n_cols_p), adj_dtype).at[:n, :n].set(adj.astype(adj_dtype))
    mask_p = None
    if has_mask:
        mask_p = jnp.zeros((n_rows_p, n_cols_p), adj_dtype).at[:n, :n].set(
            data_mask.astype(adj_dtype))
    feat_p = jnp.zeros((n_cols_p, din_p), bf16).at[:n, :din].set(feature.astype(bf16))
    wt_p = jnp.zeros((din_p, dout_p), bf16).at[:din, :dout].set(weight.T.astype(bf16))
    b_p = jnp.zeros((1, dout_p), f32).at[0, :dout].set(bias.astype(f32))

    deg_inv_p = None
    if not deg_col:
        # fn.mean divides by the UNMASKED in-degree; tiny XLA reduction, done once.
        deg = jnp.sum(adj.astype(f32), axis=1, keepdims=True)
        deg_inv = jnp.where(deg > 0.0, 1.0 / jnp.maximum(deg, 1.0), 0.0)
        deg_inv_p = jnp.zeros((n_rows_p, 1), f32).at[:n, :].set(deg_inv)

    # ---- kernel A: proj = feature @ W^T (bf16 MXU operands) ----------------
    ta = _pick_tile(n_cols_p, 512)
    proj = pl.pallas_call(
        functools.partial(_proj_kernel, ones_col=ones_col),
        out_shape=jax.ShapeDtypeStruct((n_cols_p, dout_p), bf16),
        grid=(n_cols_p // ta,),
        in_specs=[pl.BlockSpec((ta, din_p), lambda i: (i, 0)),
                  pl.BlockSpec((din_p, dout_p), lambda i: (0, 0))],
        out_specs=pl.BlockSpec((ta, dout_p), lambda i: (i, 0)),
        compiler_params=pltpu.CompilerParams(dimension_semantics=("parallel",)),
    )(feat_p, wt_p)

    # ---- kernel B: mean aggregation + bias + fused BN partial stats --------
    proj_bytes = n_cols_p * dout_p * 2
    proj_resident = proj_bytes <= 12 * 1024 * 1024   # safe even on v7x's 64 MiB VMEM

    in_specs = [pl.BlockSpec((tm, tk), lambda i, k: (i, k))]
    operands = [adj_p]
    if has_mask:
        in_specs.append(pl.BlockSpec((tm, tk), lambda i, k: (i, k)))
        operands.append(mask_p)
    if proj_resident:
        in_specs.append(pl.BlockSpec((n_cols_p, dout_p), lambda i, k: (0, 0)))
    else:
        in_specs.append(pl.BlockSpec((tk, dout_p), lambda i, k: (k, 0)))
    operands.append(proj)
    in_specs.append(pl.BlockSpec((1, dout_p), lambda i, k: (0, 0)))
    operands.append(b_p)
    if not deg_col:
        in_specs.append(pl.BlockSpec((tm, 1), lambda i, k: (i, 0)))
        operands.append(deg_inv_p)

    out_shape_b = (jax.ShapeDtypeStruct((n_rows_p, dout_p), f32),
                   jax.ShapeDtypeStruct((nrt, 8, dout_p), f32))
    out_specs_b = (pl.BlockSpec((tm, dout_p), lambda i, k: (i, 0)),
                   pl.BlockSpec((1, 8, dout_p), lambda i, k: (i, 0, 0)))

    flops = 2 * n_rows_p * n_cols_p * dout_p
    bytes_accessed = (n_rows_p * n_cols_p * 2 * (2 if has_mask else 1)
                      + (proj_bytes if proj_resident else nrt * n_cols_p * dout_p * 2)
                      + n_rows_p * dout_p * 4)

    vmem_est = (2 * tm * tk * 2 * (2 if has_mask else 1)
                + (2 * proj_bytes if proj_resident else 2 * tk * dout_p * 2)
                + tm * dout_p * 4
                + 2 * tm * dout_p * 4
                + 2 * 8 * dout_p * 4 + 2 * dout_p * 4 + 2 * tm * 4)
    vmem_limit = min(max(32 * 1024 * 1024, int(vmem_est) * 3 // 2), 60 * 1024 * 1024)

    h_lin, stats = pl.pallas_call(
        functools.partial(_agg_kernel, has_mask=has_mask, deg_col=ones_col,
                          proj_resident=proj_resident, tk=tk, tm=tm, n_valid=n),
        out_shape=out_shape_b,
        grid=(nrt, nkt),
        in_specs=in_specs,
        out_specs=out_specs_b,
        scratch_shapes=[pltpu.VMEM((tm, dout_p), f32)],          # f32 accumulator
        compiler_params=pltpu.CompilerParams(
            dimension_semantics=("parallel", "arbitrary"),
            vmem_limit_bytes=vmem_limit),
        cost_estimate=pl.CostEstimate(flops=flops, transcendentals=0,
                                      bytes_accessed=bytes_accessed),
    )(*operands)

    # ---- BatchNorm batch statistics from fused per-tile partial sums -------
    if batch_norm:
        s = jnp.sum(stats[:, 0, :dout], axis=0)
        ss = jnp.sum(stats[:, 1, :dout], axis=0)
        mu = s / n
        var = jnp.maximum(ss / n - mu * mu, 0.0)
        scale = gamma.astype(f32) * jax.lax.rsqrt(var + 1e-5)
        shift = beta.astype(f32) - mu * scale
    else:
        scale = jnp.ones((dout,), f32)
        shift = jnp.zeros((dout,), f32)
    scale_p = jnp.zeros((1, dout_p), f32).at[0, :dout].set(scale)
    shift_p = jnp.zeros((1, dout_p), f32).at[0, :dout].set(shift)

    # residual is silently disabled in the module when in_dim != out_dim
    use_residual = residual and (din == dout)
    tc = _pick_tile(n_rows_p, 2048)                 # large lane-dense elementwise tile
    operands_c = [h_lin, scale_p, shift_p]
    in_specs_c = [pl.BlockSpec((tc, dout_p), lambda i: (i, 0)),
                  pl.BlockSpec((1, dout_p), lambda i: (0, 0)),
                  pl.BlockSpec((1, dout_p), lambda i: (0, 0))]
    if use_residual:
        hin_p = jnp.zeros((n_rows_p, dout_p), f32).at[:n, :dout].set(h_in.astype(f32))
        operands_c.append(hin_p)
        in_specs_c.append(pl.BlockSpec((tc, dout_p), lambda i: (i, 0)))

    # ---- kernel C: BN-affine + ReLU + residual -----------------------------
    out = pl.pallas_call(
        functools.partial(_bn_act_res_kernel, activation=activation, residual=use_residual),
        out_shape=jax.ShapeDtypeStruct((n_rows_p, dout_p), f32),
        grid=(n_rows_p // tc,),
        in_specs=in_specs_c,
        out_specs=pl.BlockSpec((tc, dout_p), lambda i: (i, 0)),
        compiler_params=pltpu.CompilerParams(dimension_semantics=("parallel",)),
    )(*operands_c)

    return out[:n, :dout]


# ----------------------------------------------------------------- reference
def _reference(adj, feature, weight, bias, gamma, beta, *, data_mask=None,
               data_mask_node=None, residual=True, compute_dtype=jnp.float32):
    """Pure-JAX reference. compute_dtype mirrors the kernel's bf16 streams/MXU inputs."""
    f32 = jnp.float32
    cd = compute_dtype
    h_in = feature
    if data_mask_node is not None:
        feature = feature * data_mask_node
    deg = jnp.sum(adj, axis=1, keepdims=True)            # unmasked in-degree (fn.mean)
    deg_inv = jnp.where(deg > 0, 1.0 / deg, 0.0)
    adj_msg = adj if data_mask is None else adj * data_mask
    proj = jnp.dot(feature.astype(cd), weight.T.astype(cd),
                   preferred_element_type=f32).astype(cd).astype(f32)
    agg = (adj_msg.astype(cd).astype(f32) @ proj) * deg_inv
    h = agg + bias
    mu = jnp.mean(h, axis=0)
    var = jnp.mean((h - mu) ** 2, axis=0)
    h = (h - mu) * jax.lax.rsqrt(var + 1e-5) * gamma + beta
    h = jnp.maximum(h, 0.0)
    if residual and feature.shape[1] == weight.shape[0]:
        h = h_in + h
    return h


if __name__ == "__main__":
    key = jax.random.PRNGKey(0)

    # ---- test 1: small, residual path (in_dim == out_dim), no masks --------
    k_adj, k_feat, k_w, k_b, k_g, k_be = jax.random.split(key, 6)
    N, IN_DIM, OUT_DIM = 16, 32, 32
    adj = (jax.random.uniform(k_adj, (N, N)) < 0.3).astype(jnp.float32)
    feature = jax.random.normal(k_feat, (N, IN_DIM), dtype=jnp.float32)
    weight = jax.random.normal(k_w, (OUT_DIM, IN_DIM), dtype=jnp.float32) * 0.1
    bias = jax.random.normal(k_b, (OUT_DIM,), dtype=jnp.float32) * 0.01
    gamma = 1.0 + 0.1 * jax.random.normal(k_g, (OUT_DIM,), dtype=jnp.float32)
    beta = 0.05 * jax.random.normal(k_be, (OUT_DIM,), dtype=jnp.float32)

    out = gcn_layer_forward(adj, feature, weight, bias, gamma, beta,
                            batch_norm=True, activation=True, residual=True)
    out = jax.block_until_ready(out)
    assert out.shape == (N, OUT_DIM)
    ref_m = _reference(adj, feature, weight, bias, gamma, beta,
                       residual=True, compute_dtype=jnp.bfloat16)
    ref_f = _reference(adj, feature, weight, bias, gamma, beta,
                       residual=True, compute_dtype=jnp.float32)
    assert jnp.allclose(out, ref_m, atol=1e-3, rtol=1e-3), "mismatch vs matched-precision reference"
    assert jnp.allclose(out, ref_f, atol=5e-2, rtol=5e-2), "mismatch vs f32 reference (loose, bf16 stream)"

    # ---- test 2: multi-tile grid, edge & node masks, in_dim != out_dim -----
    ks = jax.random.split(jax.random.PRNGKey(1), 8)
    N2, IN2, OUT2 = 600, 96, 64
    adj2 = (jax.random.uniform(ks[0], (N2, N2)) < 0.05).astype(jnp.float32)
    feat2 = jax.random.normal(ks[1], (N2, IN2), dtype=jnp.float32)
    w2 = jax.random.normal(ks[2], (OUT2, IN2), dtype=jnp.float32) * 0.1
    b2 = jax.random.normal(ks[3], (OUT2,), dtype=jnp.float32) * 0.01
    g2 = 1.0 + 0.1 * jax.random.normal(ks[4], (OUT2,), dtype=jnp.float32)
    be2 = 0.05 * jax.random.normal(ks[5], (OUT2,), dtype=jnp.float32)
    emask = (jax.random.uniform(ks[6], (N2, N2)) < 0.8).astype(jnp.float32)
    nmask = (jax.random.uniform(ks[7], (N2, 1)) < 0.9).astype(jnp.float32)

    out2 = gcn_layer_forward(adj2, feat2, w2, b2, g2, be2,
                             data_mask=emask, data_mask_node=nmask,
                             batch_norm=True, activation=True, residual=True)
    out2 = jax.block_until_ready(out2)
    assert out2.shape == (N2, OUT2)
    ref2 = _reference(adj2, feat2, w2, b2, g2, be2, data_mask=emask,
                      data_mask_node=nmask, residual=True, compute_dtype=jnp.bfloat16)
    assert jnp.allclose(out2, ref2, atol=1e-3, rtol=1e-3), "mismatch on masked multi-tile case"

    print("KERNEL_OK")
</pallas_src>

<mosaic_0001>
module attributes {stable_mosaic.version = 11 : i64} {
  func.func @_proj_kernel(%arg0: i32, %arg1: memref<128x128xbf16, #tpu.memory_space<vmem>>, %arg2: memref<128x128xbf16, #tpu.memory_space<vmem>>, %arg3: memref<128x128xbf16, #tpu.memory_space<vmem>>) attributes {dimension_semantics = [#tpu.dimension_semantics<parallel>], iteration_bounds = array<i64: 1>, scalar_prefetch = 0 : i64, scratch_operands = 0 : i64, tpu.core_type = #tpu.core_type<tc>, window_params = [{transform_indices = @transform_0, window_bounds = array<i64: 128, 128>}, {pipeline_mode = #tpu.pipeline_mode<synchronous>, transform_indices = @transform_1, window_bounds = array<i64: 128, 128>}, {transform_indices = @transform_2, window_bounds = array<i64: 128, 128>}]} {
    %c0 = arith.constant 0 : index
    %c0_0 = arith.constant 0 : index
    %0 = vector.load %arg1[%c0, %c0_0] : memref<128x128xbf16, #tpu.memory_space<vmem>>, vector<128x128xbf16>
    %c0_1 = arith.constant 0 : index
    %c0_2 = arith.constant 0 : index
    %1 = vector.load %arg2[%c0_1, %c0_2] : memref<128x128xbf16, #tpu.memory_space<vmem>>, vector<128x128xbf16>
    %cst = arith.constant dense<0.000000e+00> : vector<128x128xf32>
    %2 = tpu.matmul %0, %1, %cst {dimension_numbers = #tpu.dot_dimension_numbers<[1], [0], [0], [1], [0, 0, 1, 1], [], []>} : vector<128x128xbf16>, vector<128x128xbf16>, vector<128x128xf32> -> vector<128x128xf32>
    %3 = tpu.iota {dimensions = array<i32: 1>} : vector<128x128xi32>
    %c32_i32 = arith.constant 32 : i32
    %4 = vector.broadcast %c32_i32 : i32 to vector<128x128xi32>
    %5 = arith.cmpi eq, %3, %4 : vector<128x128xi32>
    %cst_3 = arith.constant 1.000000e+00 : f32
    %6 = vector.broadcast %cst_3 : f32 to vector<128x128xf32>
    %7 = arith.select %5, %6, %2 : vector<128x128xi1>, vector<128x128xf32>
    %8 = arith.truncf %7 : vector<128x128xf32> to vector<128x128xbf16>
    %c0_4 = arith.constant 0 : index
    %c0_5 = arith.constant 0 : index
    %9 = vector.load %arg3[%c0_4, %c0_5] : memref<128x128xbf16, #tpu.memory_space<vmem>>, vector<128x128xbf16>
    tpu.vector_store %arg3[%c0_4, %c0_5], %8 {strides = array<i32>} : memref<128x128xbf16, #tpu.memory_space<vmem>>, vector<128x128xbf16>,
    return
  }
  func.func @transform_0(%arg0: i32) -> (i32, i32) {
    %c0_i32 = arith.constant 0 : i32
    %c0_i32_0 = arith.constant 0 : i32
    return %arg0, %c0_i32 : i32, i32
  }
  func.func @transform_1(%arg0: i32) -> (i32, i32) {
    %c0_i32 = arith.constant 0 : i32
    %c0_i32_0 = arith.constant 0 : i32
    %c0_i32_1 = arith.constant 0 : i32
    return %c0_i32, %c0_i32_0 : i32, i32
  }
  func.func @transform_2(%arg0: i32) -> (i32, i32) {
    %c0_i32 = arith.constant 0 : i32
    %c0_i32_0 = arith.constant 0 : i32
    return %arg0, %c0_i32 : i32, i32
  }
}

</mosaic_0001>

<bundles_post_ra>
// kernel: tpu_custom_call.1
= control target key start
LH: loop header
LB: loop body
LE: loop exit
PB: predicated region body
PF: predicated region fallthrough
CT: control target
= control target key end

     0   :  { %7 = vsyncpa [#allocation3], 0  ;;  %s580_s0 = inlined_call_operand.hbm [shape: bf16[128,128], index: 0, kind: input, shape index: {}]   ;;  %s581_s1 = inlined_call_operand.hbm [shape: bf16[128,128], index: 1, kind: input, shape index: {}]   ;;  %s582_s2 = inlined_call_operand.hbm [shape: bf16[128,128], index: 2, kind: output, shape index: {}]  }
   0x1   :  { %8 = vsyncpa [#allocation6], 0 }
   0x2   :  { %9 = vsyncpa [#allocation4], 0  ;;  %s14_s11 = sshll.u32 %s580_s0, 4  ;;  %s526_s12 = smov [#allocation2]   ;;  %s15_s11 = int_to_ptr.hbm [resolvable:$true] %s14_s11 }
   0x3   :  { %s16_s13 = sshll.u32 %s526_s12, 4  ;;  %s27_s16 = sshll.u32 %s581_s1, 4  ;;  %s17_s13 = int_to_ptr.vmem [resolvable:$true] %s16_s13  ;;  %s28_s16 = int_to_ptr.hbm [resolvable:$true] %s27_s16 }
   0x4   :  { %s527_s17 = smov 64   ;;  %s528_s18 = smov 4  }
   0x5   :  { %22 = dma.hbm_to_vmem [thread:$0]  %s15_s11, 1024, %s17_s13, [#allocation3], %s527_s17, %s527_s17, %s528_s18  }
   0x6   :  { %s529_s19 = smov [#allocation5]  }
   0x7   :  { %s29_s20 = sshll.u32 %s529_s19, 4  ;;  %s30_s20 = int_to_ptr.vmem [resolvable:$true] %s29_s20 }
   0x8   :  { %35 = dma.hbm_to_vmem [thread:$0]  %s28_s16, 1024, %s30_s20, [#allocation6], %s527_s17, %s527_s17, %s528_s18  }
   0x9   :  { %520 = dma.done.wait [#allocation3], 1024  }
   0xa   :  { %521 = vsyncadd [#allocation3], 4294966272 }
   0xb   :  { %522 = dma.done.wait [#allocation6], 1024  }
   0xc   :  { %523 = vsyncadd [#allocation6], 4294966272  ;;  %v371_v0 = vld [vmem:[#allocation5 + $0x38] sm:$0xff]  ;;  %v370_v1 = vld [vmem:[#allocation5 + $0x30] sm:$0xff]  ;;  %v221_v16 = vlaneseq  ;;  %s530_s0 = smov [#allocation7]   ;;  %s278_s23 = sshll.u32 %s582_s2, 4  ;;  %s279_s23 = int_to_ptr.hbm [resolvable:$true] %s278_s23 }
   0xd   :  { %172 = vmatpush.bf16.msra.mxu0 %v371_v0  ;;  %419 = vmatpush.bf16.msra.mxu1 %v371_v0  ;;  %v369_v2 = vld [vmem:[#allocation5 + $0x28] sm:$0xff]  ;;  %v368_v3 = vld [vmem:[#allocation5 + $0x20] sm:$0xff]  ;;  %v367_v4 = vld [vmem:[#allocation5 + $0x18] sm:$0xff]  ;;  %s276_s1 = sshll.u32 %s530_s0, 4  ;;  %s277_s1 = int_to_ptr.vmem [resolvable:$true] %s276_s1 }
   0xe   :  { %420 = vmatpush.bf16.msra.mxu2 %v371_v0  ;;  %421 = vmatpush.bf16.msra.mxu3 %v371_v0  ;;  %v366_v5 = vld [vmem:[#allocation5 + $0x10] sm:$0xff]  ;;  %v365_v6 = vld [vmem:[#allocation5 + $0x8] sm:$0xff]  ;;  %v364_v7 = vld [vmem:[#allocation5] sm:$0xff]  ;;  %v222_v19 = vand.u32 127, %v221_v16 }
   0xf   :  { %v356_v8 = vld [vmem:[#allocation2] sm:$0xff]  ;;  %v358_v9 = vld [vmem:[#allocation2 + $0x10] sm:$0xff]  ;;  %v357_v12 = vld [vmem:[#allocation2 + $0x8] sm:$0xff] }
  0x10   :  { %v360_v10 = vld [vmem:[#allocation2 + $0x20] sm:$0xff]  ;;  %v362_v11 = vld [vmem:[#allocation2 + $0x30] sm:$0xff]  ;;  %v359_v13 = vld [vmem:[#allocation2 + $0x18] sm:$0xff]  ;;  %vm223_vm0 = vcmp.eq.s32.totalorder %v222_v19, 32 }
  0x11   :  { %173 = vmatpush.bf16.msra.mxu0 %v370_v1  ;;  %422 = vmatpush.bf16.msra.mxu1 %v370_v1  ;;  %v361_v14 = vld [vmem:[#allocation2 + $0x28] sm:$0xff]  ;;  %v363_v15 = vld [vmem:[#allocation2 + $0x38] sm:$0xff] }
  0x12   :  { %423 = vmatpush.bf16.msra.mxu2 %v370_v1  ;;  %424 = vmatpush.bf16.msra.mxu3 %v370_v1 }
  0x15   :  { %174 = vmatpush.bf16.msra.mxu0 %v369_v2  ;;  %425 = vmatpush.bf16.msra.mxu1 %v369_v2 }
  0x16   :  { %426 = vmatpush.bf16.msra.mxu2 %v369_v2  ;;  %427 = vmatpush.bf16.msra.mxu3 %v369_v2 }
  0x19   :  { %175 = vmatpush.bf16.msra.mxu0 %v368_v3  ;;  %428 = vmatpush.bf16.msra.mxu1 %v368_v3 }
  0x1a   :  { %429 = vmatpush.bf16.msra.mxu2 %v368_v3  ;;  %430 = vmatpush.bf16.msra.mxu3 %v368_v3 }
  0x1d   :  { %176 = vmatpush.bf16.msra.mxu0 %v367_v4  ;;  %431 = vmatpush.bf16.msra.mxu1 %v367_v4 }
  0x1e   :  { %432 = vmatpush.bf16.msra.mxu2 %v367_v4  ;;  %433 = vmatpush.bf16.msra.mxu3 %v367_v4 }
  0x21   :  { %177 = vmatpush.bf16.msra.mxu0 %v366_v5  ;;  %434 = vmatpush.bf16.msra.mxu1 %v366_v5 }
  0x22   :  { %435 = vmatpush.bf16.msra.mxu2 %v366_v5  ;;  %436 = vmatpush.bf16.msra.mxu3 %v366_v5 }
  0x25   :  { %178 = vmatpush.bf16.msra.mxu0 %v365_v6  ;;  %437 = vmatpush.bf16.msra.mxu1 %v365_v6 }
  0x26   :  { %438 = vmatpush.bf16.msra.mxu2 %v365_v6  ;;  %439 = vmatpush.bf16.msra.mxu3 %v365_v6 }
  0x29   :  { %179 = vmatpush.bf16.msra.mxu0 %v364_v7  ;;  %440 = vmatpush.bf16.msra.mxu1 %v364_v7 }
  0x2a   :  { %441 = vmatpush.bf16.msra.mxu2 %v364_v7  ;;  %442 = vmatpush.bf16.msra.mxu3 %v364_v7 }
  0x2c   :  { %180 = vmatmul.bf16.vlgmr.msra.gmra.mxu0 %v356_v8  ;;  %190 = vmatmul.bf16.vlgmr.msra.gmra.mxu1 %v358_v9 }
  0x2d   :  { %200 = vmatmul.bf16.vlgmr.msra.gmra.mxu2 %v360_v10  ;;  %210 = vmatmul.bf16.vlgmr.msra.gmra.mxu3 %v362_v11 }
  0x3c   :  { %185 = vmatmul.bf16.gmra.mxu0 %v357_v12  ;;  %195 = vmatmul.bf16.gmra.mxu1 %v359_v13 }
  0x3d   :  { %205 = vmatmul.bf16.gmra.mxu2 %v361_v14  ;;  %215 = vmatmul.bf16.gmra.mxu3 %v363_v15 }
  0xa9   :  { %v181_v17 = vpop.f32.mrf.mxu0  ;;  %v191_v18 = vpop.f32.mrf.mxu1 }
  0xaa   :  { %v224_v24 = vsel %vm223_vm0, 1.0, %v181_v17  ;;  %v228_v25 = vsel %vm223_vm0, 1.0, %v191_v18 }
  0xb0   :  { %v201_v20 = vpop.f32.mrf.mxu2  ;;  %v211_v21 = vpop.f32.mrf.mxu3 }
  0xb1   :  { %v183_v22 = vpop.f32.mrf.mxu0  ;;  %v193_v23 = vpop.f32.mrf.mxu1  ;;  %v232_v32 = vsel %vm223_vm0, 1.0, %v201_v20  ;;  %v236_v33 = vsel %vm223_vm0, 1.0, %v211_v21 }
  0xb2   :  { %v225_v26 = vsel %vm223_vm0, 1.0, %v183_v22  ;;  %v229_v27 = vsel %vm223_vm0, 1.0, %v193_v23 }
  0xb3   :  { %v375_v28 = vpack.c.bf16 %v225_v26, %v224_v24  ;;  %v385_v29 = vpack.c.bf16 %v229_v27, %v228_v25 }
  0xb5   :  { %376 = vst [vmem:[#allocation7] sm:$0xff] %v375_v28  }
  0xb6   :  { %413 = vst [vmem:[#allocation7 + $0x10] sm:$0xff] %v385_v29  }
  0xb8   :  { %v203_v30 = vpop.f32.mrf.mxu2  ;;  %v213_v31 = vpop.f32.mrf.mxu3 }
  0xb9   :  { %v233_v34 = vsel %vm223_vm0, 1.0, %v203_v30  ;;  %v237_v35 = vsel %vm223_vm0, 1.0, %v213_v31  ;;  %v186_v36 = vpop.f32.mrf.mxu0  ;;  %v196_v37 = vpop.f32.mrf.mxu1 }
  0xba   :  { %v395_v38 = vpack.c.bf16 %v233_v34, %v232_v32  ;;  %v405_v39 = vpack.c.bf16 %v237_v35, %v236_v33  ;;  %v226_v44 = vsel %vm223_vm0, 1.0, %v186_v36  ;;  %v230_v45 = vsel %vm223_vm0, 1.0, %v196_v37 }
  0xbc   :  { %415 = vst [vmem:[#allocation7 + $0x20] sm:$0xff] %v395_v38  }
  0xbd   :  { %417 = vst [vmem:[#allocation7 + $0x30] sm:$0xff] %v405_v39  }
  0xc0   :  { %v206_v40 = vpop.f32.mrf.mxu2  ;;  %v216_v41 = vpop.f32.mrf.mxu3 }
  0xc1   :  { %v188_v42 = vpop.f32.mrf.mxu0  ;;  %v198_v43 = vpop.f32.mrf.mxu1  ;;  %v234_v52 = vsel %vm223_vm0, 1.0, %v206_v40  ;;  %v238_v53 = vsel %vm223_vm0, 1.0, %v216_v41 }
  0xc2   :  { %v227_v46 = vsel %vm223_vm0, 1.0, %v188_v42  ;;  %v231_v47 = vsel %vm223_vm0, 1.0, %v198_v43 }
  0xc3   :  { %v380_v48 = vpack.c.bf16 %v227_v46, %v226_v44  ;;  %v390_v49 = vpack.c.bf16 %v231_v47, %v230_v45 }
  0xc5   :  { %412 = vst [vmem:[#allocation7 + $0x8] sm:$0xff] %v380_v48  }
  0xc6   :  { %414 = vst [vmem:[#allocation7 + $0x18] sm:$0xff] %v390_v49  }
  0xc8   :  { %v208_v50 = vpop.f32.mrf.mxu2  ;;  %v218_v51 = vpop.f32.mrf.mxu3 }
  0xc9   :  { %v235_v54 = vsel %vm223_vm0, 1.0, %v208_v50  ;;  %v239_v55 = vsel %vm223_vm0, 1.0, %v218_v51 }
  0xca   :  { %v400_v56 = vpack.c.bf16 %v235_v54, %v234_v52  ;;  %v410_v57 = vpack.c.bf16 %v239_v55, %v238_v53 }
  0xcc   :  { %416 = vst [vmem:[#allocation7 + $0x28] sm:$0xff] %v400_v56  }
  0xcd   :  { %418 = vst [vmem:[#allocation7 + $0x38] sm:$0xff] %v410_v57  }
  0xce   :  { %284 = dma.vmem_to_hbm [thread:$0]  %s277_s1, 1024, %s279_s23, [#allocation4], %s527_s17, %s527_s17, %s528_s18  }
  0xcf   :  { %524 = dma.done.wait [#allocation4], 1024  }
  0xd0   :  { %525 = vsyncadd [#allocation4], 4294966272 }
  0xd1   :  { %289 = vsyncpa [#allocation3], 1 }
  0xd2   :  { %290 = vsyncpa [#allocation6], 1 }
  0xd3   :  { %291 = vsyncpa [#allocation4], 1 }

</bundles_post_ra>
